<compile_context>
chip_gen: v6e
topology: v6e:2x2x1
jax: 0.10.0
libtpu: 0.0.40
codegen_flags: <defaults>
</compile_context>

<pallas_src>
import functools
import math

import jax
import jax.numpy as jnp
import numpy as np
from jax.experimental import pallas as pl
from jax.experimental.pallas import tpu as pltpu


NEG_SLOPE = 0.01      # torch.nn.LeakyReLU default negative_slope
PACK = 8              # per-layer packed [W | b] tile is (PACK, PACK)
LANE = 128            # TPU lane width
MAX_BLOCK_B = 8192    # max batch (lane) tile per grid step


# ----------------------------------------------------------------------------
# Pallas kernel: fused MLP forward on one channels-first (features, batch) tile
# ----------------------------------------------------------------------------
def _mlp_kernel(x_ref, t_ref, wb_ref, out_ref, *, layer_dims, acts):
  """Fused MLP forward on one (features, batch-tile) block.

    x_ref  : (Dx, BT)        x, channels-first (batch on lanes)
    t_ref  : (1,  BT)        timestep, channels-first
    wb_ref : (L, PACK, PACK) packed params; wb_ref[l, :O, :I] = W_l,
                             wb_ref[l, :O, I]  = b_l
    out_ref: (Dout, BT)

  `layer_dims` = ((O_l, I_l), ...) and `acts` = (bool, ...) are static.
  Feature dims are tiny (<= 4), so each Linear is an unrolled VPU broadcast
  multiply-accumulate. The cat((x, timestep)) of the PyTorch forward is
  folded into layer 0's MAC.
  """
  x = x_ref[...].astype(jnp.float32)                       # (Dx, BT)
  t = t_ref[...].astype(jnp.float32)                       # (1,  BT)
  wb = wb_ref[...].astype(jnp.float32)                     # (L, PACK, PACK)

  # ---- layer 0: fold the feature-concat of (x, timestep) ----
  o0, i0 = layer_dims[0]
  d_x = i0 - 1                                             # columns for x
  w0 = wb[0]
  acc = w0[:o0, 0:1] * x[0:1, :]                           # (O0, BT)
  for i in range(1, d_x):
    acc = acc + w0[:o0, i:i + 1] * x[i:i + 1, :]
  acc = acc + w0[:o0, d_x:d_x + 1] * t                     # timestep column
  acc = acc + w0[:o0, i0:i0 + 1]                           # bias
  if acts[0]:
    acc = jnp.maximum(acc, NEG_SLOPE * acc)                # LeakyReLU
  h = acc

  # ---- remaining layers ----
  for l in range(1, len(layer_dims)):
    o_d, i_d = layer_dims[l]
    wl = wb[l]
    acc = wl[:o_d, 0:1] * h[0:1, :]
    for i in range(1, i_d):
      acc = acc + wl[:o_d, i:i + 1] * h[i:i + 1, :]
    acc = acc + wl[:o_d, i_d:i_d + 1]                      # bias
    if acts[l]:
      acc = jnp.maximum(acc, NEG_SLOPE * acc)
    h = acc

  out_ref[...] = h.astype(out_ref.dtype)


# ----------------------------------------------------------------------------
# Parameter packing: all layers' (W, b) -> ONE (L, PACK, PACK) array (one DMA)
# ----------------------------------------------------------------------------
def pack_params(params):
  n_layers = len(params)
  packed = np.zeros((n_layers, PACK, PACK), np.float32)
  layer_dims = []
  for l, (w, b) in enumerate(params):
    o_d, i_d = w.shape
    assert o_d <= PACK and i_d + 1 <= PACK, "layer too large for PACK tile"
    packed[l, :o_d, :i_d] = np.asarray(w, np.float32)
    packed[l, :o_d, i_d] = np.asarray(b, np.float32)
    layer_dims.append((o_d, i_d))
  return jnp.asarray(packed), tuple(layer_dims)


# ----------------------------------------------------------------------------
# Wrapper (batched equivalent of MLP.forward: net(cat((x, timestep))))
# ----------------------------------------------------------------------------
def mlp_forward(x, timestep, packed, layer_dims, acts):
  """x: (B, input_dim), timestep: (B, 1)  ->  (B, out_dim)."""
  b_sz, d_x = x.shape
  d_out = layer_dims[-1][0]
  n_layers = len(layer_dims)

  # Channels-first inputs (batch on the lane axis). For feature dim 1 these
  # are free reshapes; the concat intermediate is never materialized.
  x_cf = x.reshape(1, b_sz) if d_x == 1 else x.T
  t_cf = timestep.reshape(1, b_sz)

  # Lane tiling: whole (128-padded) batch in a single grid step when it fits,
  # otherwise large 8192-lane tiles. Tail handled by padding, not an assert.
  b_pad = pl.cdiv(b_sz, LANE) * LANE
  if b_pad <= MAX_BLOCK_B:
    block_b = b_pad
  else:
    block_b = MAX_BLOCK_B
    b_pad = pl.cdiv(b_sz, block_b) * block_b
  if b_pad != b_sz:
    x_cf = jnp.pad(x_cf, ((0, 0), (0, b_pad - b_sz)))
    t_cf = jnp.pad(t_cf, ((0, 0), (0, b_pad - b_sz)))

  kernel = functools.partial(_mlp_kernel, layer_dims=tuple(layer_dims),
                             acts=tuple(acts))

  out_cf = pl.pallas_call(
      kernel,
      out_shape=jax.ShapeDtypeStruct((d_out, b_pad), x.dtype),
      grid_spec=pltpu.PrefetchScalarGridSpec(
          num_scalar_prefetch=0,
          grid=(b_pad // block_b,),
          in_specs=[
              pl.BlockSpec((d_x, block_b), lambda i: (0, i)),
              pl.BlockSpec((1, block_b), lambda i: (0, i)),
              # all params in one tiny block, constant index -> one DMA
              pl.BlockSpec((n_layers, PACK, PACK), lambda i: (0, 0, 0)),
          ],
          out_specs=pl.BlockSpec((d_out, block_b), lambda i: (0, i)),
      ),
      compiler_params=pltpu.CompilerParams(
          dimension_semantics=("parallel",)),
  )(x_cf, t_cf, packed)

  if b_pad != b_sz:
    out_cf = out_cf[:, :b_sz]
  # (1, B) -> (B, 1) is a free reshape; only transpose when d_out > 1.
  return out_cf.reshape(b_sz, d_out) if d_out == 1 else out_cf.T


# ----------------------------------------------------------------------------
# Pure-JAX reference (mirrors the PyTorch module forward exactly)
# ----------------------------------------------------------------------------
def mlp_reference(x, timestep, params, acts):
  h = jnp.concatenate([x, timestep], axis=-1)              # (B, D0)
  for (w, b), act in zip(params, acts):
    h = h @ w.T + b
    if act:
      h = jnp.where(h >= 0, h, NEG_SLOPE * h)
  return h


# ----------------------------------------------------------------------------
# Parameter construction mirroring MLP.__init__ (MLPConfig defaults)
# ----------------------------------------------------------------------------
def build_mlp_params(key, input_dimension, hidden_dimensions,
                     activate_last=False):
  layer_dims = [(input_dimension + 1, hidden_dimensions[0])]
  acts = [True]
  for i_d, o_d in zip(hidden_dimensions[:-1], hidden_dimensions[1:]):
    layer_dims.append((i_d, o_d))
    acts.append(True)
  if hidden_dimensions[-1] != input_dimension:
    layer_dims.append((hidden_dimensions[-1], input_dimension))
    acts.append(False)
  if activate_last:
    acts[-1] = True

  params = []
  for (i_d, o_d) in layer_dims:
    key, kw, kb = jax.random.split(key, 3)
    bound = 1.0 / math.sqrt(i_d)                  # nn.Linear-style init
    w = jax.random.uniform(kw, (o_d, i_d), jnp.float32, -bound, bound)
    b = jax.random.uniform(kb, (o_d,), jnp.float32, -bound, bound)
    params.append((w, b))
  return params, tuple(acts)


# ----------------------------------------------------------------------------
# Main
# ----------------------------------------------------------------------------
if __name__ == "__main__":
  B = 256                      # small batch -> single 256-lane grid step
  input_dimension = 1          # MLPConfig defaults
  hidden_dimensions = (4, 4, 4)

  key = jax.random.PRNGKey(0)
  kp, kx, kt = jax.random.split(key, 3)

  params, acts = build_mlp_params(kp, input_dimension, hidden_dimensions,
                                  activate_last=False)
  packed, layer_dims = pack_params(params)

  x = jax.random.normal(kx, (B, input_dimension), jnp.float32)
  timestep = jax.random.uniform(kt, (B, 1), jnp.float32)

  fwd = jax.jit(mlp_forward, static_argnames=("layer_dims", "acts"))
  out = jax.block_until_ready(
      fwd(x, timestep, packed, layer_dims=layer_dims, acts=acts))

  ref = jax.block_until_ready(mlp_reference(x, timestep, params, acts))

  np.testing.assert_allclose(np.asarray(out), np.asarray(ref),
                             rtol=1e-5, atol=1e-5)
  print("KERNEL_OK")
</pallas_src>

<mosaic_0001>
module attributes {stable_mosaic.version = 11 : i64} {
  func.func @_mlp_kernel(%arg0: i32, %arg1: memref<1x256xf32, #tpu.memory_space<vmem>>, %arg2: memref<1x256xf32, #tpu.memory_space<vmem>>, %arg3: memref<4x8x8xf32, #tpu.memory_space<vmem>>, %arg4: memref<1x256xf32, #tpu.memory_space<vmem>>) attributes {dimension_semantics = [#tpu.dimension_semantics<parallel>], iteration_bounds = array<i64: 1>, scalar_prefetch = 0 : i64, scratch_operands = 0 : i64, tpu.core_type = #tpu.core_type<tc>, window_params = [{transform_indices = @transform_0, window_bounds = array<i64: 1, 256>}, {transform_indices = @transform_1, window_bounds = array<i64: 1, 256>}, {pipeline_mode = #tpu.pipeline_mode<synchronous>, transform_indices = @transform_2, window_bounds = array<i64: 4, 8, 8>}, {transform_indices = @transform_3, window_bounds = array<i64: 1, 256>}]} {
    %c0 = arith.constant 0 : index
    %c0_0 = arith.constant 0 : index
    %0 = vector.load %arg1[%c0, %c0_0] : memref<1x256xf32, #tpu.memory_space<vmem>>, vector<1x256xf32>
    %c0_1 = arith.constant 0 : index
    %c0_2 = arith.constant 0 : index
    %1 = vector.load %arg2[%c0_1, %c0_2] : memref<1x256xf32, #tpu.memory_space<vmem>>, vector<1x256xf32>
    %c0_3 = arith.constant 0 : index
    %c0_4 = arith.constant 0 : index
    %c0_5 = arith.constant 0 : index
    %2 = vector.load %arg3[%c0_3, %c0_4, %c0_5] : memref<4x8x8xf32, #tpu.memory_space<vmem>>, vector<4x8x8xf32>
    %3 = vector.extract_strided_slice %2 {offsets = [0, 0, 0], sizes = [1, 8, 8], strides = [1, 1, 1]} : vector<4x8x8xf32> to vector<1x8x8xf32>
    %4 = vector.shape_cast %3 : vector<1x8x8xf32> to vector<8x8xf32>
    %5 = vector.extract_strided_slice %4 {offsets = [0, 0], sizes = [4, 1], strides = [1, 1]} : vector<8x8xf32> to vector<4x1xf32>
    %6 = vector.broadcast %5 : vector<4x1xf32> to vector<4x256xf32>
    %7 = vector.broadcast %0 : vector<1x256xf32> to vector<4x256xf32>
    %8 = arith.mulf %6, %7 : vector<4x256xf32>
    %9 = vector.extract_strided_slice %4 {offsets = [0, 1], sizes = [4, 1], strides = [1, 1]} : vector<8x8xf32> to vector<4x1xf32>
    %10 = vector.broadcast %9 : vector<4x1xf32> to vector<4x256xf32>
    %11 = vector.broadcast %1 : vector<1x256xf32> to vector<4x256xf32>
    %12 = arith.mulf %10, %11 : vector<4x256xf32>
    %13 = arith.addf %8, %12 : vector<4x256xf32>
    %14 = vector.extract_strided_slice %4 {offsets = [0, 2], sizes = [4, 1], strides = [1, 1]} : vector<8x8xf32> to vector<4x1xf32>
    %15 = vector.broadcast %14 : vector<4x1xf32> to vector<4x256xf32>
    %16 = arith.addf %13, %15 : vector<4x256xf32>
    %cst = arith.constant 0.00999999977 : f32
    %17 = vector.broadcast %cst : f32 to vector<4x256xf32>
    %18 = arith.mulf %17, %16 : vector<4x256xf32>
    %19 = arith.maximumf %16, %18 : vector<4x256xf32>
    %20 = vector.extract_strided_slice %2 {offsets = [1, 0, 0], sizes = [1, 8, 8], strides = [1, 1, 1]} : vector<4x8x8xf32> to vector<1x8x8xf32>
    %21 = vector.shape_cast %20 : vector<1x8x8xf32> to vector<8x8xf32>
    %22 = vector.extract_strided_slice %21 {offsets = [0, 0], sizes = [4, 1], strides = [1, 1]} : vector<8x8xf32> to vector<4x1xf32>
    %23 = vector.extract_strided_slice %19 {offsets = [0, 0], sizes = [1, 256], strides = [1, 1]} : vector<4x256xf32> to vector<1x256xf32>
    %24 = vector.broadcast %22 : vector<4x1xf32> to vector<4x256xf32>
    %25 = vector.broadcast %23 : vector<1x256xf32> to vector<4x256xf32>
    %26 = arith.mulf %24, %25 : vector<4x256xf32>
    %27 = vector.extract_strided_slice %21 {offsets = [0, 1], sizes = [4, 1], strides = [1, 1]} : vector<8x8xf32> to vector<4x1xf32>
    %28 = vector.extract_strided_slice %19 {offsets = [1, 0], sizes = [1, 256], strides = [1, 1]} : vector<4x256xf32> to vector<1x256xf32>
    %29 = vector.broadcast %27 : vector<4x1xf32> to vector<4x256xf32>
    %30 = vector.broadcast %28 : vector<1x256xf32> to vector<4x256xf32>
    %31 = arith.mulf %29, %30 : vector<4x256xf32>
    %32 = arith.addf %26, %31 : vector<4x256xf32>
    %33 = vector.extract_strided_slice %21 {offsets = [0, 2], sizes = [4, 1], strides = [1, 1]} : vector<8x8xf32> to vector<4x1xf32>
    %34 = vector.extract_strided_slice %19 {offsets = [2, 0], sizes = [1, 256], strides = [1, 1]} : vector<4x256xf32> to vector<1x256xf32>
    %35 = vector.broadcast %33 : vector<4x1xf32> to vector<4x256xf32>
    %36 = vector.broadcast %34 : vector<1x256xf32> to vector<4x256xf32>
    %37 = arith.mulf %35, %36 : vector<4x256xf32>
    %38 = arith.addf %32, %37 : vector<4x256xf32>
    %39 = vector.extract_strided_slice %21 {offsets = [0, 3], sizes = [4, 1], strides = [1, 1]} : vector<8x8xf32> to vector<4x1xf32>
    %40 = vector.extract_strided_slice %19 {offsets = [3, 0], sizes = [1, 256], strides = [1, 1]} : vector<4x256xf32> to vector<1x256xf32>
    %41 = vector.broadcast %39 : vector<4x1xf32> to vector<4x256xf32>
    %42 = vector.broadcast %40 : vector<1x256xf32> to vector<4x256xf32>
    %43 = arith.mulf %41, %42 : vector<4x256xf32>
    %44 = arith.addf %38, %43 : vector<4x256xf32>
    %45 = vector.extract_strided_slice %21 {offsets = [0, 4], sizes = [4, 1], strides = [1, 1]} : vector<8x8xf32> to vector<4x1xf32>
    %46 = vector.broadcast %45 : vector<4x1xf32> to vector<4x256xf32>
    %47 = arith.addf %44, %46 : vector<4x256xf32>
    %cst_6 = arith.constant 0.00999999977 : f32
    %48 = vector.broadcast %cst_6 : f32 to vector<4x256xf32>
    %49 = arith.mulf %48, %47 : vector<4x256xf32>
    %50 = arith.maximumf %47, %49 : vector<4x256xf32>
    %51 = vector.extract_strided_slice %2 {offsets = [2, 0, 0], sizes = [1, 8, 8], strides = [1, 1, 1]} : vector<4x8x8xf32> to vector<1x8x8xf32>
    %52 = vector.shape_cast %51 : vector<1x8x8xf32> to vector<8x8xf32>
    %53 = vector.extract_strided_slice %52 {offsets = [0, 0], sizes = [4, 1], strides = [1, 1]} : vector<8x8xf32> to vector<4x1xf32>
    %54 = vector.extract_strided_slice %50 {offsets = [0, 0], sizes = [1, 256], strides = [1, 1]} : vector<4x256xf32> to vector<1x256xf32>
    %55 = vector.broadcast %53 : vector<4x1xf32> to vector<4x256xf32>
    %56 = vector.broadcast %54 : vector<1x256xf32> to vector<4x256xf32>
    %57 = arith.mulf %55, %56 : vector<4x256xf32>
    %58 = vector.extract_strided_slice %52 {offsets = [0, 1], sizes = [4, 1], strides = [1, 1]} : vector<8x8xf32> to vector<4x1xf32>
    %59 = vector.extract_strided_slice %50 {offsets = [1, 0], sizes = [1, 256], strides = [1, 1]} : vector<4x256xf32> to vector<1x256xf32>
    %60 = vector.broadcast %58 : vector<4x1xf32> to vector<4x256xf32>
    %61 = vector.broadcast %59 : vector<1x256xf32> to vector<4x256xf32>
    %62 = arith.mulf %60, %61 : vector<4x256xf32>
    %63 = arith.addf %57, %62 : vector<4x256xf32>
    %64 = vector.extract_strided_slice %52 {offsets = [0, 2], sizes = [4, 1], strides = [1, 1]} : vector<8x8xf32> to vector<4x1xf32>
    %65 = vector.extract_strided_slice %50 {offsets = [2, 0], sizes = [1, 256], strides = [1, 1]} : vector<4x256xf32> to vector<1x256xf32>
    %66 = vector.broadcast %64 : vector<4x1xf32> to vector<4x256xf32>
    %67 = vector.broadcast %65 : vector<1x256xf32> to vector<4x256xf32>
    %68 = arith.mulf %66, %67 : vector<4x256xf32>
    %69 = arith.addf %63, %68 : vector<4x256xf32>
    %70 = vector.extract_strided_slice %52 {offsets = [0, 3], sizes = [4, 1], strides = [1, 1]} : vector<8x8xf32> to vector<4x1xf32>
    %71 = vector.extract_strided_slice %50 {offsets = [3, 0], sizes = [1, 256], strides = [1, 1]} : vector<4x256xf32> to vector<1x256xf32>
    %72 = vector.broadcast %70 : vector<4x1xf32> to vector<4x256xf32>
    %73 = vector.broadcast %71 : vector<1x256xf32> to vector<4x256xf32>
    %74 = arith.mulf %72, %73 : vector<4x256xf32>
    %75 = arith.addf %69, %74 : vector<4x256xf32>
    %76 = vector.extract_strided_slice %52 {offsets = [0, 4], sizes = [4, 1], strides = [1, 1]} : vector<8x8xf32> to vector<4x1xf32>
    %77 = vector.broadcast %76 : vector<4x1xf32> to vector<4x256xf32>
    %78 = arith.addf %75, %77 : vector<4x256xf32>
    %cst_7 = arith.constant 0.00999999977 : f32
    %79 = vector.broadcast %cst_7 : f32 to vector<4x256xf32>
    %80 = arith.mulf %79, %78 : vector<4x256xf32>
    %81 = arith.maximumf %78, %80 : vector<4x256xf32>
    %82 = vector.extract_strided_slice %2 {offsets = [3, 0, 0], sizes = [1, 8, 8], strides = [1, 1, 1]} : vector<4x8x8xf32> to vector<1x8x8xf32>
    %83 = vector.shape_cast %82 : vector<1x8x8xf32> to vector<8x8xf32>
    %84 = vector.extract_strided_slice %83 {offsets = [0, 0], sizes = [1, 1], strides = [1, 1]} : vector<8x8xf32> to vector<1x1xf32>
    %85 = vector.extract_strided_slice %81 {offsets = [0, 0], sizes = [1, 256], strides = [1, 1]} : vector<4x256xf32> to vector<1x256xf32>
    %86 = vector.broadcast %84 : vector<1x1xf32> to vector<1x256xf32>
    %87 = arith.mulf %86, %85 : vector<1x256xf32>
    %88 = vector.extract_strided_slice %83 {offsets = [0, 1], sizes = [1, 1], strides = [1, 1]} : vector<8x8xf32> to vector<1x1xf32>
    %89 = vector.extract_strided_slice %81 {offsets = [1, 0], sizes = [1, 256], strides = [1, 1]} : vector<4x256xf32> to vector<1x256xf32>
    %90 = vector.broadcast %88 : vector<1x1xf32> to vector<1x256xf32>
    %91 = arith.mulf %90, %89 : vector<1x256xf32>
    %92 = arith.addf %87, %91 : vector<1x256xf32>
    %93 = vector.extract_strided_slice %83 {offsets = [0, 2], sizes = [1, 1], strides = [1, 1]} : vector<8x8xf32> to vector<1x1xf32>
    %94 = vector.extract_strided_slice %81 {offsets = [2, 0], sizes = [1, 256], strides = [1, 1]} : vector<4x256xf32> to vector<1x256xf32>
    %95 = vector.broadcast %93 : vector<1x1xf32> to vector<1x256xf32>
    %96 = arith.mulf %95, %94 : vector<1x256xf32>
    %97 = arith.addf %92, %96 : vector<1x256xf32>
    %98 = vector.extract_strided_slice %83 {offsets = [0, 3], sizes = [1, 1], strides = [1, 1]} : vector<8x8xf32> to vector<1x1xf32>
    %99 = vector.extract_strided_slice %81 {offsets = [3, 0], sizes = [1, 256], strides = [1, 1]} : vector<4x256xf32> to vector<1x256xf32>
    %100 = vector.broadcast %98 : vector<1x1xf32> to vector<1x256xf32>
    %101 = arith.mulf %100, %99 : vector<1x256xf32>
    %102 = arith.addf %97, %101 : vector<1x256xf32>
    %103 = vector.extract_strided_slice %83 {offsets = [0, 4], sizes = [1, 1], strides = [1, 1]} : vector<8x8xf32> to vector<1x1xf32>
    %104 = vector.broadcast %103 : vector<1x1xf32> to vector<1x256xf32>
    %105 = arith.addf %102, %104 : vector<1x256xf32>
    %c0_8 = arith.constant 0 : index
    %c0_9 = arith.constant 0 : index
    %106 = vector.load %arg4[%c0_8, %c0_9] : memref<1x256xf32, #tpu.memory_space<vmem>>, vector<1x256xf32>
    tpu.vector_store %arg4[%c0_8, %c0_9], %105 {strides = array<i32>} : memref<1x256xf32, #tpu.memory_space<vmem>>, vector<1x256xf32>,
    return
  }
  func.func @transform_0(%arg0: i32) -> (i32, i32) {
    %c0_i32 = arith.constant 0 : i32
    %c0_i32_0 = arith.constant 0 : i32
    return %c0_i32, %arg0 : i32, i32
  }
  func.func @transform_1(%arg0: i32) -> (i32, i32) {
    %c0_i32 = arith.constant 0 : i32
    %c0_i32_0 = arith.constant 0 : i32
    return %c0_i32, %arg0 : i32, i32
  }
  func.func @transform_2(%arg0: i32) -> (i32, i32, i32) {
    %c0_i32 = arith.constant 0 : i32
    %c0_i32_0 = arith.constant 0 : i32
    %c0_i32_1 = arith.constant 0 : i32
    %c0_i32_2 = arith.constant 0 : i32
    return %c0_i32, %c0_i32_0, %c0_i32_1 : i32, i32, i32
  }
  func.func @transform_3(%arg0: i32) -> (i32, i32) {
    %c0_i32 = arith.constant 0 : i32
    %c0_i32_0 = arith.constant 0 : i32
    return %c0_i32, %arg0 : i32, i32
  }
}

</mosaic_0001>

<bundles_post_ra>
// kernel: mlp_forward.1
= control target key start
LH: loop header
LB: loop body
LE: loop exit
PB: predicated region body
PF: predicated region fallthrough
CT: control target
= control target key end

     0   :  { %8 = vsyncpa [#allocation3], 0  ;;  %s456_s0 = inlined_call_operand.vmem [shape: f32[1,256], index: 0, kind: input, shape index: {}]   ;;  %s457_s1 = inlined_call_operand.vmem [shape: f32[1,256], index: 1, kind: input, shape index: {}]   ;;  %s458_s2 = inlined_call_operand.hbm [shape: f32[4,8,8], index: 2, kind: input, shape index: {}]   ;;  %s459_s3 = inlined_call_operand.hbm [shape: f32[1,256], index: 3, kind: output, shape index: {}]  }
   0x1   :  { %9 = vsyncpa [#allocation4], 0  ;;  %s389_s12 = smov [#allocation2]  }
   0x2   :  { %s19_s13 = sshll.u32 %s389_s12, 4  ;;  %s20_s13 = int_to_ptr.vmem [resolvable:$true] %s19_s13 }
   0x3   :  { %s353_s14 = scalar_lea.vmem %s20_s13, 512  ;;  %p358_p1 = scmp.lt.s32.totalorder %s20_s13, %s20_s13 }
   0x4   :  { %p354_p0 = scmp.ne.s32.totalorder %s20_s13, %s353_s14  ;;  %p359_p2 = scmp.lt.s32.totalorder %s353_s14, %s353_s14 }
   0x6   :  { %p360_p3 = por %p359_p2, %p358_p1 }
   0x8   :  { %p361_p4 = pnand %p360_p3, %p354_p0 }
   0xa   :  { %364 = shalt.err (!%p361_p4)
}
   0xb   :  { %s390_s15 = smov 128   ;;  %s391_s16 = smov 8  }
   0xc   :  { %25 = dma.hbm_to_vmem [thread:$0]  %s458_s2, 512, %s20_s13, [#allocation3], %s390_s15, %s390_s15, %s391_s16  }
   0xd   :  { %385 = dma.done.wait [#allocation3], 512  }
   0xe   :  { %386 = vsyncadd [#allocation3], 4294966784  ;;  %v392_v0 = vmov 2   ;;  %v393_v1 = vmov 0   ;;  %v31_v2 = vld [vmem:[#allocation2] sm:$0xff]  ;;  %v32_v3 = vld [vmem:[#allocation2 + $0x8] sm:$0xff]  ;;  %v41_v9 = vlaneseq }
   0xf   :  { %329 = vset.pattern.permute.xlu1 %v392_v0  ;;  %327 = vset.pattern.permute.xlu0 %v393_v1  ;;  %v394_v4 = vmov 1   ;;  %v395_v5 = vmov 3   ;;  %v33_v6 = vld [vmem:[#allocation2 + $0x10] sm:$0xff]  ;;  %v396_v7 = vmov 4   ;;  %v34_v8 = vld [vmem:[#allocation2 + $0x18] sm:$0xff] }
  0x10   :  { %73 = vperm.xlu1 %329, %v31_v2   ;;  %37 = vperm.xlu0 %327, %v31_v2   ;;  %v423_v10 = vshrl.u32 %v41_v9, 7  ;;  %v29_v13 = vld [vmem:[%s456_s0] sm:$0x3]  ;;  %s398_s0 = smov [#allocation5]   ;;  %vm299_vm0 = vcmp.lt.s32.totalorder %v41_v9, 256 }
  0x11   :  { %v30_v14 = vld [vmem:[%s457_s1] sm:$0x3]  ;;  %s308_s1 = sshll.u32 %s398_s0, 4  ;;  %s309_s1 = int_to_ptr.vmem [resolvable:$true] %s308_s1 }
  0x12   :  { %v426_v11 = vsub.s32 0, %v423_v10  ;;  %v429_v12 = vsub.s32 1, %v423_v10  ;;  %v135_v34 = vsub.s32 3, %v423_v10  ;;  %v119_v35 = vsub.s32 2, %v423_v10  ;;  %s365_s22 = scalar_lea.vmem %s309_s1, 32  ;;  %p370_p6 = scmp.lt.s32.totalorder %s309_s1, %s309_s1 }
  0x13   :  { %p366_p5 = scmp.ne.s32.totalorder %s309_s1, %s365_s22  ;;  %p371_p7 = scmp.lt.s32.totalorder %s365_s22, %s365_s22 }
  0x14   :  { %330 = vset.pattern.permute.xlu1 %v393_v1  ;;  %328 = vset.pattern.permute.xlu0 %v394_v4  ;;  %v44_v17 = vrot.slane %v29_v13, %v426_v11  ;;  %v48_v18 = vrot.slane %v29_v13, %v429_v12  ;;  %v61_v19 = vrot.slane %v30_v14, %v426_v11 }
  0x15   :  { %84 = vperm.xlu1 %330, %v32_v3   ;;  %54 = vperm.xlu0 %328, %v31_v2   ;;  %v65_v20 = vrot.slane %v30_v14, %v429_v12  ;;  %p372_p8 = por %p371_p7, %p370_p6 }
  0x17   :  { %p373_p9 = pnand %p372_p8, %p366_p5 }
  0x19   :  { %331 = vset.pattern.permute.xlu1 %v394_v4  ;;  %332 = vset.pattern.permute.xlu0 %v392_v0 }
  0x1a   :  { %98 = vperm.xlu1 %331, %v32_v3   ;;  %114 = vperm.xlu0 %332, %v32_v3  }
  0x1e   :  { %333 = vset.pattern.permute.xlu1 %v395_v5  ;;  %335 = vset.pattern.permute.xlu0 %v393_v1 }
  0x1f   :  { %130 = vperm.xlu1 %333, %v32_v3   ;;  %157 = vperm.xlu0 %335, %v33_v6  }
  0x23   :  { %334 = vset.pattern.permute.xlu1 %v396_v7  ;;  %338 = vset.pattern.permute.xlu0 %v395_v5 }
  0x24   :  { %146 = vperm.xlu1 %334, %v32_v3   ;;  %203 = vperm.xlu0 %338, %v33_v6  }
  0x28   :  { %336 = vset.pattern.permute.xlu1 %v394_v4  ;;  %341 = vset.pattern.permute.xlu0 %v394_v4 }
  0x29   :  { %171 = vperm.xlu1 %336, %v33_v6   ;;  %236 = vperm.xlu0 %341, %v34_v8  }
  0x2d   :  { %337 = vset.pattern.permute.xlu1 %v392_v0  ;;  %344 = vset.pattern.permute.xlu0 %v396_v7 }
  0x2e   :  { %187 = vperm.xlu1 %337, %v33_v6   ;;  %274 = vperm.xlu0 %344, %v34_v8  }
  0x32   :  { %339 = vset.pattern.permute.xlu1 %v396_v7 }
  0x33   :  { %219 = vperm.xlu1 %339, %v33_v6  }
  0x37   :  { %340 = vset.pattern.permute.xlu1 %v393_v1 }
  0x38   :  { %230 = vperm.xlu1 %340, %v34_v8  }
  0x3c   :  { %342 = vset.pattern.permute.xlu1 %v392_v0 }
  0x3d   :  { %250 = vperm.xlu1 %342, %v34_v8  }
  0x41   :  { %343 = vset.pattern.permute.xlu1 %v395_v5 }
  0x42   :  { %262 = vperm.xlu1 %343, %v34_v8  }
  0x8b   :  { %v38_v15 = vpop.permute.xlu0 %37  ;;  %v74_v16 = vpop.permute.xlu1 %73 }
  0x8c   :  { %v51_v23 = vmul.f32 %v44_v17, %v38_v15  ;;  %v52_v24 = vmul.f32 %v48_v18, %v38_v15 }
  0x90   :  { %v55_v21 = vpop.permute.xlu0 %54  ;;  %v85_v22 = vpop.permute.xlu1 %84 }
  0x91   :  { %v68_v25 = vmul.f32 %v61_v19, %v55_v21  ;;  %v69_v26 = vmul.f32 %v65_v20, %v55_v21 }
  0x93   :  { %v70_v27 = vadd.f32 %v68_v25, %v51_v23  ;;  %v71_v28 = vadd.f32 %v69_v26, %v52_v24 }
  0x95   :  { %v76_v29 = vadd.f32 %v74_v16, %v70_v27  ;;  %v77_v30 = vadd.f32 %v74_v16, %v71_v28  ;;  %v99_v31 = vpop.permute.xlu1 %98  ;;  %v115_v45 = vpop.permute.xlu0 %114 }
  0x97   :  { %v78_v32 = vmul.f32 0.01, %v76_v29  ;;  %v79_v33 = vmul.f32 0.01, %v77_v30 }
  0x99   :  { %v80_v36 = vmax.f32 %v76_v29, %v78_v32  ;;  %v81_v37 = vmax.f32 %v77_v30, %v79_v33 }
  0x9a   :  { %v131_v42 = vpop.permute.xlu1 %130  ;;  %v158_v4 = vpop.permute.xlu0 %157 }
  0x9b   :  { %v90_v38 = vrot.slane %v80_v36, %v426_v11  ;;  %v94_v39 = vrot.slane %v81_v37, %v426_v11  ;;  %v104_v40 = vrot.slane %v80_v36, %v429_v12  ;;  %v108_v41 = vrot.slane %v81_v37, %v429_v12 }
  0x9c   :  { %v136_v43 = vrot.slane %v80_v36, %v135_v34  ;;  %v140_v44 = vrot.slane %v81_v37, %v135_v34  ;;  %v120_v46 = vrot.slane %v80_v36, %v119_v35  ;;  %v124_v47 = vrot.slane %v81_v37, %v119_v35 }
  0x9d   :  { %v95_v48 = vmul.f32 %v90_v38, %v85_v22  ;;  %v96_v49 = vmul.f32 %v94_v39, %v85_v22  ;;  %v109_v50 = vmul.f32 %v104_v40, %v99_v31  ;;  %v110_v51 = vmul.f32 %v108_v41, %v99_v31 }
  0x9e   :  { %v125_v54 = vmul.f32 %v120_v46, %v115_v45  ;;  %v126_v55 = vmul.f32 %v124_v47, %v115_v45  ;;  %v141_v57 = vmul.f32 %v136_v43, %v131_v42  ;;  %v142_v58 = vmul.f32 %v140_v44, %v131_v42 }
  0x9f   :  { %v111_v52 = vadd.f32 %v109_v50, %v95_v48  ;;  %v112_v53 = vadd.f32 %v110_v51, %v96_v49  ;;  %v147_v56 = vpop.permute.xlu1 %146  ;;  %v204_v24 = vpop.permute.xlu0 %203  ;;  %v397_v49 = vmov 1966171168  }
  0xa0   :  { %v283_v50 = vunpack.c.l.s4 %v397_v49 }
  0xa1   :  { %v127_v59 = vadd.f32 %v125_v54, %v111_v52  ;;  %v128_v60 = vadd.f32 %v126_v55, %v112_v53 }
  0xa3   :  { %v143_v61 = vadd.f32 %v141_v57, %v127_v59  ;;  %v144_v62 = vadd.f32 %v142_v58, %v128_v60  ;;  %v284_v60 = vunpack.c.0.s8 %v283_v50 }
  0xa4   :  { %v172_v63 = vpop.permute.xlu1 %171  ;;  %v237_v42 = vpop.permute.xlu0 %236 }
  0xa5   :  { %v149_v0 = vadd.f32 %v147_v56, %v143_v61  ;;  %v150_v1 = vadd.f32 %v147_v56, %v144_v62 }
  0xa7   :  { %v151_v2 = vmul.f32 0.01, %v149_v0  ;;  %v152_v3 = vmul.f32 0.01, %v150_v1 }
  0xa9   :  { %v153_v5 = vmax.f32 %v149_v0, %v151_v2  ;;  %v154_v6 = vmax.f32 %v150_v1, %v152_v3  ;;  %v188_v7 = vpop.permute.xlu1 %187  ;;  %v275_v1 = vpop.permute.xlu0 %274 }
  0xab   :  { %v177_v8 = vrot.slane %v153_v5, %v429_v12  ;;  %v181_v13 = vrot.slane %v154_v6, %v429_v12  ;;  %v163_v14 = vrot.slane %v153_v5, %v426_v11  ;;  %v167_v15 = vrot.slane %v154_v6, %v426_v11 }
  0xac   :  { %v193_v16 = vrot.slane %v153_v5, %v119_v35  ;;  %v197_v17 = vrot.slane %v154_v6, %v119_v35  ;;  %v209_v18 = vrot.slane %v153_v5, %v135_v34  ;;  %v213_v19 = vrot.slane %v154_v6, %v135_v34 }
  0xad   :  { %v182_v20 = vmul.f32 %v177_v8, %v172_v63  ;;  %v183_v21 = vmul.f32 %v181_v13, %v172_v63  ;;  %v168_v22 = vmul.f32 %v163_v14, %v158_v4  ;;  %v169_v23 = vmul.f32 %v167_v15, %v158_v4 }
  0xae   :  { %v220_v25 = vpop.permute.xlu1 %219  ;;  %v198_v28 = vmul.f32 %v193_v16, %v188_v7  ;;  %v199_v29 = vmul.f32 %v197_v17, %v188_v7  ;;  %v214_v31 = vmul.f32 %v209_v18, %v204_v24  ;;  %v215_v32 = vmul.f32 %v213_v19, %v204_v24 }
  0xaf   :  { %v184_v26 = vadd.f32 %v182_v20, %v168_v22  ;;  %v185_v27 = vadd.f32 %v183_v21, %v169_v23  ;;  %v287_v4 = vsub.s32 %v284_v60, %v423_v10 }
  0xb1   :  { %v200_v30 = vadd.f32 %v198_v28, %v184_v26  ;;  %v201_v12 = vadd.f32 %v199_v29, %v185_v27 }
  0xb3   :  { %v216_v33 = vadd.f32 %v214_v31, %v200_v30  ;;  %v217_v11 = vadd.f32 %v215_v32, %v201_v12  ;;  %v231_v36 = vpop.permute.xlu1 %230 }
  0xb5   :  { %v222_v35 = vadd.f32 %v220_v25, %v216_v33  ;;  %v223_v37 = vadd.f32 %v220_v25, %v217_v11 }
  0xb7   :  { %v224_v34 = vmul.f32 0.01, %v222_v35  ;;  %v225_v38 = vmul.f32 0.01, %v223_v37 }
  0xb8   :  { %v251_v41 = vpop.permute.xlu1 %250 }
  0xb9   :  { %v226_v39 = vmax.f32 %v222_v35, %v224_v34  ;;  %v227_v40 = vmax.f32 %v223_v37, %v225_v38 }
  0xbb   :  { %v253_v43 = vrot.slane %v226_v39, 2  ;;  %v254_v44 = vrot.slane %v227_v40, 2  ;;  %v241_v45 = vrot.slane %v226_v39, 1  ;;  %v242_v46 = vrot.slane %v227_v40, 1 }
  0xbc   :  { %v233_v47 = vmul.f32 %v231_v36, %v226_v39  ;;  %v234_v48 = vmul.f32 %v231_v36, %v227_v40  ;;  %v265_v53 = vrot.slane %v226_v39, 3  ;;  %v266_v54 = vrot.slane %v227_v40, 3 }
  0xbd   :  { %v245_v51 = vmul.f32 %v241_v45, %v237_v42  ;;  %v246_v52 = vmul.f32 %v242_v46, %v237_v42  ;;  %v263_v55 = vpop.permute.xlu1 %262  ;;  %v257_v56 = vmul.f32 %v253_v43, %v251_v41  ;;  %v258_v57 = vmul.f32 %v254_v44, %v251_v41 }
  0xbe   :  { %v269_v61 = vmul.f32 %v265_v53, %v263_v55  ;;  %v270_v62 = vmul.f32 %v266_v54, %v263_v55 }
  0xbf   :  { %v247_v58 = vadd.f32 %v245_v51, %v233_v47  ;;  %v248_v59 = vadd.f32 %v246_v52, %v234_v48 }
  0xc1   :  { %v259_v63 = vadd.f32 %v257_v56, %v247_v58  ;;  %v260_v0 = vadd.f32 %v258_v57, %v248_v59 }
  0xc3   :  { %v271_v2 = vadd.f32 %v269_v61, %v259_v63  ;;  %v272_v3 = vadd.f32 %v270_v62, %v260_v0 }
  0xc5   :  { %v277_v5 = vadd.f32 %v275_v1, %v271_v2  ;;  %v278_v6 = vadd.f32 %v275_v1, %v272_v3 }
  0xc7   :  { %v281_v7 = vcombine.low %v277_v5, %v278_v6 }
  0xc9   :  { %v288_v8 = vrot.slane %v281_v7, %v287_v4 }
  0xcb   :  { %v295_v13 = vrot.slane %v288_v8, %v287_v4 }
  0xcd   :  { %301 = vst.msk [vmem:[#allocation5] sm:$0x3] %vm299_vm0, %v295_v13 }
  0xce   :  { %376 = shalt.err (!%p373_p9)
}
  0xcf   :  { %311 = dma.vmem_to_hbm [thread:$0]  %s309_s1, 32, %s459_s3, [#allocation4]  }
  0xd0   :  { %387 = dma.done.wait [#allocation4], 32  }
  0xd1   :  { %388 = vsyncadd [#allocation4], 4294967264 }
  0xd2   :  { %315 = vsyncpa [#allocation3], 1 }
  0xd3   :  { %316 = vsyncpa [#allocation4], 1 }

</bundles_post_ra>
